<compile_context>
chip_gen: v5e
topology: v5e:2x2
jax: 0.10.0
libtpu: 0.0.40
codegen_flags: <defaults>
</compile_context>

<pallas_src>
import functools
import math

import jax
import jax.numpy as jnp
from jax.experimental import pallas as pl
from jax.experimental.pallas import tpu as pltpu


def _round_up(x, m):
    return (x + m - 1) // m * m


def _vmem_capacity_bytes():
    """Physical VMEM per TensorCore (falls back to 128 MiB)."""
    try:
        info = pltpu.get_tpu_info()
        for name in ("vmem_capacity_bytes", "vmem_size_bytes", "vmem_bytes"):
            v = getattr(info, name, None)
            if v:
                return int(v)
    except Exception:
        pass
    try:
        if "v7" in jax.devices()[0].device_kind.lower():
            return 64 * 2**20
    except Exception:
        pass
    return 128 * 2**20


def _tensorcores_per_chip():
    try:
        if "v7" in jax.devices()[0].device_kind.lower():
            return 2
    except Exception:
        pass
    return 1


def _pick_tn(d_model, tn_target):
    """Column tile: full width if it fits; else the largest multiple of 128
    <= tn_target that divides d_model (avoids re-padding the weight each call);
    fall back to tn_target (with padding) if no such divisor exists."""
    tn_target = max(128, tn_target)
    if d_model <= tn_target:
        return d_model
    c = (tn_target // 128) * 128
    while c >= 128:
        if d_model % c == 0:
            return c
        c -= 128
    return (tn_target // 128) * 128


def _linear_softmax_kernel(x_ref, w_ref, b_ref, o_ref, *scratch,
                           nj, tn, out_is_f32):
    # x_ref: (tm, d_in)       row tile (already in the compute dtype)
    # w_ref: (d_in, tn)       pre-transposed weight tile -> no per-step vxpose
    # b_ref: (1, tn) f32      bias tile (f32 keeps the -1e30 pad trick safe)
    # o_ref: (tm, dmod_p)     full-width output block, resident across j
    j = pl.program_id(1)

    z = jax.lax.dot_general(
        x_ref[...], w_ref[...],
        dimension_numbers=(((1,), (0,)), ((), ())),
        preferred_element_type=jnp.float32)
    z = z + b_ref[...]

    if nj == 1:
        # Single column tile: softmax entirely in registers, one lane-dense store.
        m = jnp.max(z, axis=-1, keepdims=True)
        e = jnp.exp(z - m)
        denom = jnp.sum(e, axis=-1, keepdims=True)
        inv = pl.reciprocal(denom, approx=True)        # EUP slot (free-ish)
        inv = inv * (2.0 - denom * inv)                # one Newton step -> exact
        o_ref[...] = (e * inv).astype(o_ref.dtype)
        return

    if out_is_f32:
        (m_ref,) = scratch
        stage = o_ref                 # stage logits directly in the output block
    else:
        acc_ref, m_ref = scratch
        stage = acc_ref               # f32 staging for low-precision outputs

    # Stage this j's logits (static slices under pl.when -> aligned, unmasked vst).
    for jj in range(nj):
        @pl.when(j == jj)
        def _store(jj=jj):
            stage[:, jj * tn:(jj + 1) * tn] = z.astype(stage.dtype)

    # Running row max, updated per step (hides under MXU / DMA).
    row_max = jnp.max(z, axis=-1, keepdims=True)

    @pl.when(j == 0)
    def _init():
        m_ref[...] = row_max

    @pl.when(j > 0)
    def _update():
        m_ref[...] = jnp.maximum(m_ref[...], row_max)

    @pl.when(j == nj - 1)
    def _finalize():
        m = m_ref[...]
        denom = jnp.zeros_like(m)
        for jj in range(nj):                    # pass 1: exp in place + sum
            sl = slice(jj * tn, (jj + 1) * tn)
            e = jnp.exp(stage[:, sl].astype(jnp.float32) - m)
            stage[:, sl] = e.astype(stage.dtype)
            denom = denom + jnp.sum(e, axis=-1, keepdims=True)
        inv = pl.reciprocal(denom, approx=True)
        inv = inv * (2.0 - denom * inv)
        for jj in range(nj):                    # pass 2: normalize + store
            sl = slice(jj * tn, (jj + 1) * tn)
            o_ref[:, sl] = (stage[:, sl].astype(jnp.float32) * inv
                            ).astype(o_ref.dtype)


@functools.partial(jax.jit, static_argnames=("tm", "tn", "compute_dtype"))
def output_embedder(x, weight, bias, *, tm=None, tn=None, compute_dtype=None):
    """softmax(x @ weight.T + bias, axis=-1).

    x:      (..., d_in)
    weight: (d_model, d_in)   -- PyTorch nn.Linear layout
    bias:   (d_model,)
    compute_dtype: e.g. jnp.bfloat16 for a bf16 matmul with f32 accumulation.
    """
    orig_shape = x.shape
    d_in = orig_shape[-1]
    d_model = weight.shape[0]
    n_rows = int(math.prod(orig_shape[:-1])) if len(orig_shape) > 1 else 1
    out_dtype = x.dtype
    out_is_f32 = bool(out_dtype == jnp.float32)

    vmem_cap = _vmem_capacity_bytes()
    n_tc = _tensorcores_per_chip()

    # Generation-aware tile defaults: fat tiles on v5e/v6e (128 MiB VMEM,
    # HBM/step-overhead bound); leaner on v7x (64 MiB VMEM, 3.2 TB/s HBM).
    big_vmem = vmem_cap >= 100 * 2**20
    if tm is None:
        tm = 512 if big_vmem else 256
    if tn is None:
        tn = 1024 if big_vmem else 512

    x2d = x.reshape(n_rows, d_in)

    # Weight: transpose once to (d_in, d_model); pre-cast x / weight to the
    # compute dtype here (halves weight HBM traffic + buffers for bf16).
    # TODO(synk): for repeated calls, cache the transposed/cast/padded weight
    # outside this function instead of recomputing it per call.
    wT = weight.T
    if compute_dtype is not None:
        x2d = x2d.astype(compute_dtype)
        wT = wT.astype(compute_dtype)
    elif x2d.dtype != wT.dtype:
        ct = jnp.promote_types(x2d.dtype, wT.dtype)
        x2d = x2d.astype(ct)
        wT = wT.astype(ct)
    b_f32 = bias.astype(jnp.float32)

    x_b = jnp.dtype(x2d.dtype).itemsize
    w_b = jnp.dtype(wT.dtype).itemsize
    o_b = jnp.dtype(out_dtype).itemsize

    # Column tiling (prefer divisors of d_model -> no weight re-padding).
    tn_eff = _pick_tn(d_model, tn)
    dmod_p = _round_up(d_model, tn_eff)
    nj = dmod_p // tn_eff
    use_acc = (nj > 1) and (not out_is_f32)

    # Row tiling: sublane-aligned (16 for 16-bit data); on multi-TC chips
    # guarantee >= n_tc row steps so the "parallel" axis covers every core.
    row_align = max(8, 32 // min(x_b, o_b))
    tm_target = min(tm, _round_up(max(1, -(-n_rows // n_tc)), row_align))
    tm_eff = max(row_align, (tm_target // row_align) * row_align)

    def footprint(tm_):
        f = 2 * tm_ * d_in * x_b            # x tile (double buffered)
        f += 2 * d_in * tn_eff * w_b        # weight tile (double buffered)
        f += 2 * tn_eff * 4                 # bias tile
        f += 2 * tm_ * dmod_p * o_b         # resident full-width output block
        if use_acc:
            f += tm_ * dmod_p * 4           # f32 staging scratch
        f += tm_ * 4                        # running row max
        return f

    budget = int(vmem_cap * 0.85)
    while tm_eff > row_align and footprint(tm_eff) > budget:
        tm_eff = max(row_align, _round_up(tm_eff // 2, row_align))
    # TODO(synk): LLM-scale vocabularies where even the minimum tm overshoots
    # VMEM need a two-pass / online-softmax restructure over d_model.

    rows_p = _round_up(n_rows, tm_eff)
    ni = rows_p // tm_eff

    if rows_p != n_rows:
        x2d = jnp.pad(x2d, ((0, rows_p - n_rows), (0, 0)))
    w_p, b_p = wT, b_f32
    if dmod_p != d_model:
        w_p = jnp.pad(wT, ((0, 0), (0, dmod_p - d_model)))
        # Padded vocab columns get a huge negative (f32) bias so exp() -> 0.
        b_p = jnp.pad(b_f32, (0, dmod_p - d_model), constant_values=-1e30)
    b2d = b_p.reshape(1, dmod_p)

    vmem_limit = min(int(vmem_cap * 0.9),
                     max(32 * 2**20, footprint(tm_eff) + 16 * 2**20))

    scratch_shapes = []
    if nj > 1:
        if use_acc:
            scratch_shapes.append(pltpu.VMEM((tm_eff, dmod_p), jnp.float32))
        scratch_shapes.append(pltpu.VMEM((tm_eff, 1), jnp.float32))

    kernel = functools.partial(_linear_softmax_kernel,
                               nj=nj, tn=tn_eff, out_is_f32=out_is_f32)

    out2d = pl.pallas_call(
        kernel,
        out_shape=jax.ShapeDtypeStruct((rows_p, dmod_p), out_dtype),
        grid_spec=pltpu.PrefetchScalarGridSpec(
            num_scalar_prefetch=0,
            grid=(ni, nj),
            in_specs=[
                pl.BlockSpec((tm_eff, d_in), lambda i, j: (i, 0)),    # row tile
                pl.BlockSpec((d_in, tn_eff), lambda i, j: (0, j)),    # weight.T tile
                pl.BlockSpec((1, tn_eff), lambda i, j: (0, j)),       # bias tile
            ],
            out_specs=pl.BlockSpec((tm_eff, dmod_p), lambda i, j: (i, 0)),
            scratch_shapes=scratch_shapes,
        ),
        compiler_params=pltpu.CompilerParams(
            dimension_semantics=("parallel", "arbitrary"),
            vmem_limit_bytes=int(vmem_limit),
        ),
    )(x2d, w_p, b2d)

    out2d = out2d[:n_rows, :d_model]
    return out2d.reshape(*orig_shape[:-1], d_model)


def _reference(x, weight, bias):
    x32 = x.astype(jnp.float32)
    w32 = weight.astype(jnp.float32)
    b32 = bias.astype(jnp.float32)
    return jax.nn.softmax(
        jnp.einsum("...d,md->...m", x32, w32,
                   precision=jax.lax.Precision.HIGHEST) + b32,
        axis=-1)


if __name__ == "__main__":
    key = jax.random.PRNGKey(0)
    kx, kw, kb, k2, k3 = jax.random.split(key, 5)

    # --- 1. Small shapes consistent with the module (single column tile) -----
    batch, seq, d_in, d_model = 2, 8, 32, 128
    x = jax.random.normal(kx, (batch, seq, d_in), dtype=jnp.float32)
    bound = 1.0 / (d_in ** 0.5)
    weight = jax.random.uniform(
        kw, (d_model, d_in), minval=-bound, maxval=bound, dtype=jnp.float32)
    bias = jax.random.uniform(
        kb, (d_model,), minval=-bound, maxval=bound, dtype=jnp.float32)

    out = jax.block_until_ready(output_embedder(x, weight, bias))
    ref = _reference(x, weight, bias)
    assert out.shape == (batch, seq, d_model)
    assert jnp.allclose(out, ref, atol=2e-5, rtol=2e-5)

    # --- 2. Wider vocab: defaults, forced multi-tile (tn=128), bf16 compute --
    b2, s2, di2, dm2 = 2, 72, 48, 640
    kx2, kw2, kb2 = jax.random.split(k2, 3)
    x2 = jax.random.normal(kx2, (b2, s2, di2), dtype=jnp.float32)
    bound2 = 1.0 / (di2 ** 0.5)
    w2 = jax.random.uniform(kw2, (dm2, di2), minval=-bound2, maxval=bound2,
                            dtype=jnp.float32)
    bi2 = jax.random.uniform(kb2, (dm2,), minval=-bound2, maxval=bound2,
                             dtype=jnp.float32)
    ref2 = _reference(x2, w2, bi2)

    out2 = jax.block_until_ready(output_embedder(x2, w2, bi2))
    assert out2.shape == (b2, s2, dm2)
    assert jnp.allclose(out2, ref2, atol=2e-5, rtol=2e-5)

    out2_tiled = jax.block_until_ready(output_embedder(x2, w2, bi2, tn=128))
    assert jnp.allclose(out2_tiled, ref2, atol=2e-5, rtol=2e-5)

    out2_bf16 = jax.block_until_ready(
        output_embedder(x2, w2, bi2, compute_dtype=jnp.bfloat16))
    assert jnp.allclose(out2_bf16, ref2, atol=2e-3, rtol=2e-2)

    # --- 3. Non-128-multiple vocab (padding path) + bf16 output (acc path) ---
    b3, s3, di3, dm3 = 2, 10, 32, 200
    kx3, kw3, kb3 = jax.random.split(k3, 3)
    x3 = jax.random.normal(kx3, (b3, s3, di3),
                           dtype=jnp.float32).astype(jnp.bfloat16)
    bound3 = 1.0 / (di3 ** 0.5)
    w3 = jax.random.uniform(kw3, (dm3, di3), minval=-bound3, maxval=bound3,
                            dtype=jnp.float32)
    bi3 = jax.random.uniform(kb3, (dm3,), minval=-bound3, maxval=bound3,
                             dtype=jnp.float32)

    out3 = jax.block_until_ready(
        output_embedder(x3, w3, bi3, tn=128, compute_dtype=jnp.bfloat16))
    ref3 = _reference(x3, w3, bi3)
    assert out3.shape == (b3, s3, dm3)
    assert out3.dtype == jnp.bfloat16
    assert jnp.allclose(out3.astype(jnp.float32), ref3, atol=2e-3, rtol=5e-2)

    print("KERNEL_OK")
</pallas_src>

<mosaic_0001>
module attributes {stable_mosaic.version = 11 : i64} {
  func.func @_linear_softmax_kernel(%arg0: i32, %arg1: i32, %arg2: memref<16x32xf32, #tpu.memory_space<vmem>>, %arg3: memref<32x128xf32, #tpu.memory_space<vmem>>, %arg4: memref<1x128xf32, #tpu.memory_space<vmem>>, %arg5: memref<16x128xf32, #tpu.memory_space<vmem>>) attributes {dimension_semantics = [#tpu.dimension_semantics<parallel>, #tpu.dimension_semantics<arbitrary>], iteration_bounds = array<i64: 1, 1>, scalar_prefetch = 0 : i64, scratch_operands = 0 : i64, tpu.core_type = #tpu.core_type<tc>, window_params = [{transform_indices = @transform_0, window_bounds = array<i64: 16, 32>}, {transform_indices = @transform_1, window_bounds = array<i64: 32, 128>}, {transform_indices = @transform_2, window_bounds = array<i64: 1, 128>}, {transform_indices = @transform_3, window_bounds = array<i64: 16, 128>}]} {
    %c0 = arith.constant 0 : index
    %c0_0 = arith.constant 0 : index
    %0 = vector.load %arg2[%c0, %c0_0] : memref<16x32xf32, #tpu.memory_space<vmem>>, vector<16x32xf32>
    %c0_1 = arith.constant 0 : index
    %c0_2 = arith.constant 0 : index
    %1 = vector.load %arg3[%c0_1, %c0_2] : memref<32x128xf32, #tpu.memory_space<vmem>>, vector<32x128xf32>
    %cst = arith.constant dense<0.000000e+00> : vector<16x128xf32>
    %2 = tpu.matmul %0, %1, %cst {dimension_numbers = #tpu.dot_dimension_numbers<[1], [0], [0], [1], [0, 0, 1, 1], [], []>} : vector<16x32xf32>, vector<32x128xf32>, vector<16x128xf32> -> vector<16x128xf32>
    %c0_3 = arith.constant 0 : index
    %c0_4 = arith.constant 0 : index
    %3 = vector.load %arg4[%c0_3, %c0_4] : memref<1x128xf32, #tpu.memory_space<vmem>>, vector<1x128xf32>
    %4 = vector.broadcast %3 : vector<1x128xf32> to vector<16x128xf32>
    %5 = arith.addf %2, %4 : vector<16x128xf32>
    %cst_5 = arith.constant dense<0xFF800000> : vector<16xf32>
    %6 = vector.multi_reduction <maximumf>, %5, %cst_5 [1] : vector<16x128xf32> to vector<16xf32>
    %7 = vector.shape_cast %6 : vector<16xf32> to vector<16x1xf32>
    %8 = vector.broadcast %7 : vector<16x1xf32> to vector<16x128xf32>
    %9 = arith.subf %5, %8 : vector<16x128xf32>
    %10 = math.exp %9 : vector<16x128xf32>
    %cst_6 = arith.constant dense<0.000000e+00> : vector<16xf32>
    %11 = vector.multi_reduction <add>, %10, %cst_6 [1] : vector<16x128xf32> to vector<16xf32>
    %12 = vector.shape_cast %11 : vector<16xf32> to vector<16x1xf32>
    %13 = tpu.reciprocal %12 {approx = true} : vector<16x1xf32> -> vector<16x1xf32>
    %14 = arith.mulf %12, %13 : vector<16x1xf32>
    %cst_7 = arith.constant 2.000000e+00 : f32
    %15 = vector.broadcast %cst_7 : f32 to vector<16x1xf32>
    %16 = arith.subf %15, %14 : vector<16x1xf32>
    %17 = arith.mulf %13, %16 : vector<16x1xf32>
    %18 = vector.broadcast %17 : vector<16x1xf32> to vector<16x128xf32>
    %19 = arith.mulf %10, %18 : vector<16x128xf32>
    %c0_8 = arith.constant 0 : index
    %c0_9 = arith.constant 0 : index
    %20 = vector.load %arg5[%c0_8, %c0_9] : memref<16x128xf32, #tpu.memory_space<vmem>>, vector<16x128xf32>
    tpu.vector_store %arg5[%c0_8, %c0_9], %19 {strides = array<i32>} : memref<16x128xf32, #tpu.memory_space<vmem>>, vector<16x128xf32>,
    return
  }
  func.func @transform_0(%arg0: i32, %arg1: i32) -> (i32, i32) {
    %c0_i32 = arith.constant 0 : i32
    %c0_i32_0 = arith.constant 0 : i32
    return %arg0, %c0_i32 : i32, i32
  }
  func.func @transform_1(%arg0: i32, %arg1: i32) -> (i32, i32) {
    %c0_i32 = arith.constant 0 : i32
    %c0_i32_0 = arith.constant 0 : i32
    return %c0_i32, %arg1 : i32, i32
  }
  func.func @transform_2(%arg0: i32, %arg1: i32) -> (i32, i32) {
    %c0_i32 = arith.constant 0 : i32
    %c0_i32_0 = arith.constant 0 : i32
    return %c0_i32, %arg1 : i32, i32
  }
  func.func @transform_3(%arg0: i32, %arg1: i32) -> (i32, i32) {
    %c0_i32 = arith.constant 0 : i32
    %c0_i32_0 = arith.constant 0 : i32
    return %arg0, %c0_i32 : i32, i32
  }
}

</mosaic_0001>

<bundles_post_ra>
// kernel: output_embedder.1
= control target key start
LH: loop header
LB: loop body
LE: loop exit
PB: predicated region body
PF: predicated region fallthrough
CT: control target
= control target key end

     0   :  { %8 = vsyncpa [#allocation3], 0  ;;  %s277_s0 = inlined_call_operand.hbm [shape: f32[16,32], index: 0, kind: input, shape index: {}]   ;;  %s278_s1 = inlined_call_operand.hbm [shape: f32[32,128], index: 1, kind: input, shape index: {}]   ;;  %s279_s2 = inlined_call_operand.vmem [shape: f32[1,128], index: 2, kind: input, shape index: {}]   ;;  %s280_s3 = inlined_call_operand.hbm [shape: f32[16,128], index: 3, kind: output, shape index: {}]  }
   0x1   :  { %9 = vsyncpa [#allocation6], 0 }
   0x2   :  { %10 = vsyncpa [#allocation4], 0  ;;  %s15_s14 = sshll.u32 %s277_s0, 4  ;;  %s231_s15 = smov [#allocation2]   ;;  %s16_s14 = int_to_ptr.hbm [resolvable:$true] %s15_s14 }
   0x3   :  { %s17_s16 = sshll.u32 %s231_s15, 4  ;;  %s28_s19 = sshll.u32 %s278_s1, 4  ;;  %s18_s16 = int_to_ptr.vmem [resolvable:$true] %s17_s16  ;;  %s29_s19 = int_to_ptr.hbm [resolvable:$true] %s28_s19 }
   0x4   :  { %s232_s20 = smov 128   ;;  %s233_s21 = smov 8  }
   0x5   :  { %23 = dma.hbm_to_vmem [thread:$0]  %s16_s14, 256, %s18_s16, [#allocation3], %s232_s20, %s232_s20, %s233_s21  }
   0x6   :  { %s234_s22 = smov [#allocation5]  }
   0x7   :  { %s30_s23 = sshll.u32 %s234_s22, 4  ;;  %s31_s23 = int_to_ptr.vmem [resolvable:$true] %s30_s23 }
   0x8   :  { %36 = dma.hbm_to_vmem [thread:$0]  %s29_s19, 512, %s31_s23, [#allocation6], %s232_s20, %s232_s20, %s233_s21  }
   0x9   :  { %225 = dma.done.wait [#allocation3], 256  }
   0xa   :  { %226 = vsyncadd [#allocation3], 4294967040 }
   0xb   :  { %227 = dma.done.wait [#allocation6], 512  }
   0xc   :  { %228 = vsyncadd [#allocation6], 4294966784  ;;  %v52_v0 = vld [vmem:[#allocation5 + $0x18] sm:$0xff]  ;;  %v51_v1 = vld [vmem:[#allocation5 + $0x10] sm:$0xff]  ;;  %vm57_vm0 = vcmask 261120   ;;  %s119_s27 = sshll.u32 %s280_s3, 4  ;;  %s120_s27 = int_to_ptr.hbm [resolvable:$true] %s119_s27 }
   0xd   :  { %76 = vmatpush.msra.mxu0 %v52_v0  ;;  %135 = vmatpush.msra.mxu1 %v52_v0  ;;  %v50_v2 = vld [vmem:[#allocation5 + $0x8] sm:$0xff]  ;;  %v49_v3 = vld [vmem:[#allocation5] sm:$0xff]  ;;  %v47_v4 = vld [vmem:[#allocation2] sm:$0xff] }
   0xe   :  { %v48_v5 = vld [vmem:[#allocation2 + $0x8] sm:$0xff]  ;;  %v144_v6 = vld [vmem:[%s279_s2] ss:$0 sm:$0xff]  ;;  %s235_s2 = smov [#allocation7]  }
   0xf   :  { %77 = vmatpush.msra.mxu0 %v51_v1  ;;  %136 = vmatpush.msra.mxu1 %v51_v1  ;;  %s117_s24 = sshll.u32 %s235_s2, 4  ;;  %s118_s24 = int_to_ptr.vmem [resolvable:$true] %s117_s24 }
  0x11   :  { %78 = vmatpush.msra.mxu0 %v50_v2  ;;  %137 = vmatpush.msra.mxu1 %v50_v2 }
  0x13   :  { %79 = vmatpush.msra.mxu0 %v49_v3  ;;  %138 = vmatpush.msra.mxu1 %v49_v3 }
  0x14   :  { %133 = vmatmul.msk.f32.vlgmr.msra.gmra.mxu0 %vm57_vm0, %v47_v4  ;;  %134 = vmatmul.msk.f32.vlgmr.msra.gmra.mxu1 %vm57_vm0, %v48_v5 }
  0x91   :  { %v81_v7 = vpop.f32.mrf.mxu0  ;;  %v84_v9 = vpop.f32.mrf.mxu1 }
  0x92   :  { %v82_v8 = vadd.f32 %v144_v6, %v81_v7  ;;  %v85_v10 = vadd.f32 %v144_v6, %v84_v9 }
  0x94   :  { %87 = vmax.xlane.f32.xlu0 %v82_v8 }
  0x9c   :  { %89 = vmax.xlane.f32.xlu0 %v85_v10 }
 0x107   :  { %v88_v11 = vpop.xlane.xlu0 %87 }
 0x108   :  { %v91_v12 = vsub.f32 %v82_v8, %v88_v11 }
 0x10a   :  { %v93_v13 = vmul.f32 1.442695, %v91_v12 }
 0x10c   :  { %145 = vpow2.f32 %v93_v13 }
 0x10f   :  { %v90_v14 = vpop.xlane.xlu0 %89 }
 0x110   :  { %v92_v15 = vsub.f32 %v85_v10, %v90_v14 }
 0x112   :  { %v146_v16 = vpop.eup %145  ;;  %v95_v17 = vmul.f32 1.442695, %v92_v15 }
 0x113   :  { %97 = vadd.xlane.f32.xlu1 %v146_v16 }
 0x114   :  { %147 = vpow2.f32 %v95_v17 }
 0x11a   :  { %v148_v18 = vpop.eup %147 }
 0x11b   :  { %99 = vadd.xlane.f32.xlu1 %v148_v18 }
 0x186   :  { %v98_v19 = vpop.xlane.xlu1 %97 }
 0x187   :  { %149 = vrcp.f32 %v98_v19 }
 0x18d   :  { %v150_v20 = vpop.eup %149 }
 0x18e   :  { %v103_v21 = vmul.f32 %v150_v20, %v98_v19  ;;  %v100_v22 = vpop.xlane.xlu1 %99 }
 0x18f   :  { %151 = vrcp.f32 %v100_v22 }
 0x190   :  { %v105_v23 = vsub.f32 2.0, %v103_v21 }
 0x192   :  { %v107_v24 = vmul.f32 %v150_v20, %v105_v23 }
 0x194   :  { %v109_v25 = vmul.f32 %v146_v16, %v107_v24 }
 0x195   :  { %v152_v26 = vpop.eup %151 }
 0x196   :  { %111 = vst [vmem:[#allocation7] sm:$0xff] %v109_v25  ;;  %v104_v27 = vmul.f32 %v152_v26, %v100_v22 }
 0x198   :  { %v106_v28 = vsub.f32 2.0, %v104_v27 }
 0x19a   :  { %v108_v29 = vmul.f32 %v152_v26, %v106_v28 }
 0x19c   :  { %v110_v30 = vmul.f32 %v148_v18, %v108_v29 }
 0x19e   :  { %112 = vst [vmem:[#allocation7 + $0x8] sm:$0xff] %v110_v30 }
 0x19f   :  { %125 = dma.vmem_to_hbm [thread:$0]  %s118_s24, 256, %s120_s27, [#allocation4], %s232_s20, %s232_s20, %s233_s21  }
 0x1a0   :  { %229 = dma.done.wait [#allocation4], 256  }
 0x1a1   :  { %230 = vsyncadd [#allocation4], 4294967040 }
 0x1a2   :  { %130 = vsyncpa [#allocation3], 1 }
 0x1a3   :  { %131 = vsyncpa [#allocation6], 1 }
 0x1a4   :  { %132 = vsyncpa [#allocation4], 1 }

</bundles_post_ra>
